<compile_context>
chip_gen: v5e
topology: v5e:2x2
jax: 0.10.0
libtpu: 0.0.40
codegen_flags: <defaults>
</compile_context>

<pallas_src>
import numpy as np
import jax
import jax.numpy as jnp
from jax.experimental import pallas as pl
from jax.experimental.pallas import tpu as pltpu


def _embed_nd_kernel(pos_ref, selw_hi_ref, selw_lo_ref, phase_ref, out_ref):
    """out[m, 4*d + k] = sin(pos[m, axis(d)] * omega_d + phase_k).

    pos_ref:     (tm, n_axes)  token positions for this tile (f32)
    selw_hi_ref: (n_axes, W)   per-column omega, f32 head (zero outside owner axis)
    selw_lo_ref: (n_axes, W)   per-column omega, f32 tail (correction term)
    phase_ref:   (1, W)        [pi/2, pi, 0, pi/2] per frequency
                               => sin(a+phase) = [cos a, -sin a, sin a, cos a]
    out_ref:     (tm, W)       lane-dense final interleaved layout, W = 4*D_half
    """
    n_axes = pos_ref.shape[1]
    acc = phase_ref[...] + pos_ref[:, 0:1] * selw_hi_ref[0:1, :]
    for i in range(1, n_axes):
        acc = acc + pos_ref[:, i:i + 1] * selw_hi_ref[i:i + 1, :]
    for i in range(n_axes):
        acc = acc + pos_ref[:, i:i + 1] * selw_lo_ref[i:i + 1, :]
    # TODO(synk): per perf review, evaluating sin/cos once at D_half width and
    # assembling [cos,-sin,sin,cos] with XLU lane interleave would halve the
    # transcendental work on v7x/v6e, but it is explicitly gated on a bundle
    # dump showing the interleave stays in vregs; the verified single-sin
    # phase-trick form is kept (v5e is output-write bound either way).
    out_ref[...] = jnp.sin(acc).astype(out_ref.dtype)


def _choose_token_tile(M, *, tm_max=2048, tm_pref=1024, max_tiles=8):
    """Pick the token tile size.

    Goals (perf review items 1-3):
      * tile big enough (up to tm_max) to amortize the ~0.35us per-grid-step
        pipeline overhead,
      * at least 2 grid tiles (prefer up to `max_tiles` while each tile keeps
        >= tm_pref rows) so the "parallel" axis can shard across TensorCores,
      * tile derived from cdiv(M, ntiles) so the ragged tail is small rather
        than a fixed power of two that would waste HBM write bandwidth.
    """
    if M <= 8:
        return 8
    ntiles = max(
        pl.cdiv(M, tm_max),                    # must fit each tile under tm_max
        min(max_tiles, pl.cdiv(M, tm_pref)),   # more tiles while >= tm_pref rows
        min(2, pl.cdiv(M, 8)),                 # >=2 tiles for 2-TC chips (v7x)
    )
    tm = -(-M // ntiles)                       # ceil divide
    tm = ((tm + 7) // 8) * 8                   # sublane multiple of 8
    return max(8, min(tm, tm_max))


def embed_nd(ids, axes_dim, theta, *, out_dtype=jnp.float32, tm_max=2048):
    """Pallas implementation of EmbedND.forward.

    ids: (batch, seq, n_axes) integer or float positions.
    Returns: (batch, 1, seq, sum(axes_dim)//2, 2, 2) in `out_dtype` (f32 default).
    """
    ids = jnp.asarray(ids)
    B, S, n_axes = ids.shape
    assert n_axes == len(axes_dim)
    d_halves = [d // 2 for d in axes_dim]
    D_half = sum(d_halves)
    W = 4 * D_half  # lane-dense output width (interleaved [cos,-sin,sin,cos])

    # ---- Host-side constants (float64, matching the torch reference).
    # selw_hi/lo[i, 4*d + k] = omega of frequency d if d belongs to axis i else 0,
    # split into two f32 pieces so pos*omega keeps f64-level accuracy in f32.
    selw_hi_np = np.zeros((n_axes, W), dtype=np.float32)
    selw_lo_np = np.zeros((n_axes, W), dtype=np.float32)
    off = 0
    for i, d in enumerate(axes_dim):
        omega = 1.0 / (float(theta) ** (np.arange(0, d, 2, dtype=np.float64) / d))
        om_hi = omega.astype(np.float32)
        om_lo = (omega - om_hi.astype(np.float64)).astype(np.float32)
        dh = d // 2
        selw_hi_np[i, 4 * off:4 * (off + dh)] = np.repeat(om_hi, 4)
        selw_lo_np[i, 4 * off:4 * (off + dh)] = np.repeat(om_lo, 4)
        off += dh
    selw_hi = jnp.asarray(selw_hi_np)
    selw_lo = jnp.asarray(selw_lo_np)

    # phase[4*d + k] = [pi/2, pi, 0, pi/2][k] so that
    # sin(angle + phase) == [cos(angle), -sin(angle), sin(angle), cos(angle)].
    phase_np = np.tile(
        np.array([np.pi / 2, np.pi, 0.0, np.pi / 2], dtype=np.float64), D_half)
    phase = jnp.asarray(phase_np.astype(np.float32)).reshape(1, W)

    # ---- Flatten tokens; no padding and no post-kernel slice: the last
    # (possibly ragged) tile is handled by Pallas' masked boundary store.
    M = B * S
    pos = ids.reshape(M, n_axes).astype(jnp.float32)
    tm = _choose_token_tile(M, tm_max=tm_max)
    grid = pl.cdiv(M, tm)

    # ---- VMEM budget for the chosen tile (double-buffered in/out; the (tm, 3)
    # pos block is lane-padded to 128 lanes in VMEM).
    out_itemsize = np.dtype(out_dtype).itemsize
    vmem_est = 2 * tm * W * out_itemsize          # output double buffer
    vmem_est += 2 * tm * 128 * 4                  # lane-padded pos double buffer
    vmem_est += 2 * 3 * 8 * max(W, 128) * 4       # selw_hi/lo + phase (padded)
    vmem_limit = int(min(64 << 20, max(8 << 20, 2 * vmem_est)))

    out = pl.pallas_call(
        _embed_nd_kernel,
        out_shape=jax.ShapeDtypeStruct((M, W), out_dtype),
        grid_spec=pltpu.PrefetchScalarGridSpec(
            num_scalar_prefetch=0,
            grid=(grid,),
            in_specs=[
                pl.BlockSpec((tm, n_axes), lambda i: (i, 0)),
                pl.BlockSpec((n_axes, W), lambda i: (0, 0)),
                pl.BlockSpec((n_axes, W), lambda i: (0, 0)),
                pl.BlockSpec((1, W), lambda i: (0, 0)),
            ],
            out_specs=pl.BlockSpec((tm, W), lambda i: (i, 0)),
        ),
        compiler_params=pltpu.CompilerParams(
            dimension_semantics=("parallel",),
            vmem_limit_bytes=vmem_limit,
        ),
        cost_estimate=pl.CostEstimate(
            flops=int(M) * W * (4 * n_axes + 2),
            transcendentals=int(M) * W,
            bytes_accessed=int(M) * W * out_itemsize + int(M) * n_axes * 4,
        ),
    )(pos, selw_hi, selw_lo, phase)

    out = out.reshape(B, S, D_half, 2, 2)   # metadata-only reshape (no padding)
    return out[:, None]                     # (B, 1, S, D_half, 2, 2)


def _reference(ids_np, axes_dim, theta):
    """NumPy/float64 port of the PyTorch EmbedND.forward for verification."""
    B, S, _ = ids_np.shape
    parts = []
    for i, d in enumerate(axes_dim):
        scale = np.arange(0, d, 2, dtype=np.float64) / d
        omega = 1.0 / theta ** scale
        ang = np.einsum('...n,d->...nd', ids_np[..., i].astype(np.float64), omega)
        stk = np.stack([np.cos(ang), -np.sin(ang), np.sin(ang), np.cos(ang)], axis=-1)
        parts.append(stk.reshape(B, S, d // 2, 2, 2).astype(np.float32))
    emb = np.concatenate(parts, axis=-3)
    return emb[:, None]


if __name__ == "__main__":
    # Small shapes consistent with the module: ids (batch=2, seq=8, n_axes=3),
    # axes_dim summing to dim=64, theta=10000 (Flux-style, scaled down).
    axes_dim = [16, 24, 24]
    theta = 10000
    key = jax.random.PRNGKey(0)
    ids = jax.random.randint(key, (2, 8, 3), 0, 128, dtype=jnp.int32)

    out = embed_nd(ids, axes_dim, theta)
    out = jax.block_until_ready(out)

    ref = _reference(np.asarray(ids), axes_dim, theta)
    assert out.shape == ref.shape, (out.shape, ref.shape)
    np.testing.assert_allclose(np.asarray(out), ref, rtol=1e-4, atol=5e-4)

    print("KERNEL_OK")
</pallas_src>

<mosaic_0001>
module attributes {stable_mosaic.version = 11 : i64} {
  func.func @_embed_nd_kernel(%arg0: i32, %arg1: memref<8x3xf32, #tpu.memory_space<vmem>>, %arg2: memref<3x128xf32, #tpu.memory_space<vmem>>, %arg3: memref<3x128xf32, #tpu.memory_space<vmem>>, %arg4: memref<1x128xf32, #tpu.memory_space<vmem>>, %arg5: memref<8x128xf32, #tpu.memory_space<vmem>>) attributes {dimension_semantics = [#tpu.dimension_semantics<parallel>], iteration_bounds = array<i64: 2>, scalar_prefetch = 0 : i64, scratch_operands = 0 : i64, tpu.core_type = #tpu.core_type<tc>, window_params = [{transform_indices = @transform_0, window_bounds = array<i64: 8, 3>}, {pipeline_mode = #tpu.pipeline_mode<synchronous>, transform_indices = @transform_1, window_bounds = array<i64: 3, 128>}, {pipeline_mode = #tpu.pipeline_mode<synchronous>, transform_indices = @transform_2, window_bounds = array<i64: 3, 128>}, {pipeline_mode = #tpu.pipeline_mode<synchronous>, transform_indices = @transform_3, window_bounds = array<i64: 1, 128>}, {transform_indices = @transform_4, window_bounds = array<i64: 8, 128>}]} {
    %c0 = arith.constant 0 : index
    %c0_0 = arith.constant 0 : index
    %0 = vector.load %arg4[%c0, %c0_0] : memref<1x128xf32, #tpu.memory_space<vmem>>, vector<1x128xf32>
    %c0_1 = arith.constant 0 : index
    %c0_2 = arith.constant 0 : index
    %1 = vector.load %arg1[%c0_1, %c0_2] : memref<8x3xf32, #tpu.memory_space<vmem>>, vector<8x1xf32>
    %c0_3 = arith.constant 0 : index
    %c0_4 = arith.constant 0 : index
    %2 = vector.load %arg2[%c0_3, %c0_4] : memref<3x128xf32, #tpu.memory_space<vmem>>, vector<1x128xf32>
    %3 = vector.broadcast %1 : vector<8x1xf32> to vector<8x128xf32>
    %4 = vector.broadcast %2 : vector<1x128xf32> to vector<8x128xf32>
    %5 = arith.mulf %3, %4 : vector<8x128xf32>
    %6 = vector.broadcast %0 : vector<1x128xf32> to vector<8x128xf32>
    %7 = arith.addf %6, %5 : vector<8x128xf32>
    %c0_5 = arith.constant 0 : index
    %c1 = arith.constant 1 : index
    %8 = vector.load %arg1[%c0_5, %c1] : memref<8x3xf32, #tpu.memory_space<vmem>>, vector<8x1xf32>
    %c1_6 = arith.constant 1 : index
    %c0_7 = arith.constant 0 : index
    %9 = vector.load %arg2[%c1_6, %c0_7] : memref<3x128xf32, #tpu.memory_space<vmem>>, vector<1x128xf32>
    %10 = vector.broadcast %8 : vector<8x1xf32> to vector<8x128xf32>
    %11 = vector.broadcast %9 : vector<1x128xf32> to vector<8x128xf32>
    %12 = arith.mulf %10, %11 : vector<8x128xf32>
    %13 = arith.addf %7, %12 : vector<8x128xf32>
    %c0_8 = arith.constant 0 : index
    %c2 = arith.constant 2 : index
    %14 = vector.load %arg1[%c0_8, %c2] : memref<8x3xf32, #tpu.memory_space<vmem>>, vector<8x1xf32>
    %c2_9 = arith.constant 2 : index
    %c0_10 = arith.constant 0 : index
    %15 = vector.load %arg2[%c2_9, %c0_10] : memref<3x128xf32, #tpu.memory_space<vmem>>, vector<1x128xf32>
    %16 = vector.broadcast %14 : vector<8x1xf32> to vector<8x128xf32>
    %17 = vector.broadcast %15 : vector<1x128xf32> to vector<8x128xf32>
    %18 = arith.mulf %16, %17 : vector<8x128xf32>
    %19 = arith.addf %13, %18 : vector<8x128xf32>
    %c0_11 = arith.constant 0 : index
    %c0_12 = arith.constant 0 : index
    %20 = vector.load %arg1[%c0_11, %c0_12] : memref<8x3xf32, #tpu.memory_space<vmem>>, vector<8x1xf32>
    %c0_13 = arith.constant 0 : index
    %c0_14 = arith.constant 0 : index
    %21 = vector.load %arg3[%c0_13, %c0_14] : memref<3x128xf32, #tpu.memory_space<vmem>>, vector<1x128xf32>
    %22 = vector.broadcast %20 : vector<8x1xf32> to vector<8x128xf32>
    %23 = vector.broadcast %21 : vector<1x128xf32> to vector<8x128xf32>
    %24 = arith.mulf %22, %23 : vector<8x128xf32>
    %25 = arith.addf %19, %24 : vector<8x128xf32>
    %c0_15 = arith.constant 0 : index
    %c1_16 = arith.constant 1 : index
    %26 = vector.load %arg1[%c0_15, %c1_16] : memref<8x3xf32, #tpu.memory_space<vmem>>, vector<8x1xf32>
    %c1_17 = arith.constant 1 : index
    %c0_18 = arith.constant 0 : index
    %27 = vector.load %arg3[%c1_17, %c0_18] : memref<3x128xf32, #tpu.memory_space<vmem>>, vector<1x128xf32>
    %28 = vector.broadcast %26 : vector<8x1xf32> to vector<8x128xf32>
    %29 = vector.broadcast %27 : vector<1x128xf32> to vector<8x128xf32>
    %30 = arith.mulf %28, %29 : vector<8x128xf32>
    %31 = arith.addf %25, %30 : vector<8x128xf32>
    %c0_19 = arith.constant 0 : index
    %c2_20 = arith.constant 2 : index
    %32 = vector.load %arg1[%c0_19, %c2_20] : memref<8x3xf32, #tpu.memory_space<vmem>>, vector<8x1xf32>
    %c2_21 = arith.constant 2 : index
    %c0_22 = arith.constant 0 : index
    %33 = vector.load %arg3[%c2_21, %c0_22] : memref<3x128xf32, #tpu.memory_space<vmem>>, vector<1x128xf32>
    %34 = vector.broadcast %32 : vector<8x1xf32> to vector<8x128xf32>
    %35 = vector.broadcast %33 : vector<1x128xf32> to vector<8x128xf32>
    %36 = arith.mulf %34, %35 : vector<8x128xf32>
    %37 = arith.addf %31, %36 : vector<8x128xf32>
    %38 = math.sin %37 : vector<8x128xf32>
    %c0_23 = arith.constant 0 : index
    %c0_24 = arith.constant 0 : index
    %39 = vector.load %arg5[%c0_23, %c0_24] : memref<8x128xf32, #tpu.memory_space<vmem>>, vector<8x128xf32>
    tpu.vector_store %arg5[%c0_23, %c0_24], %38 {strides = array<i32>} : memref<8x128xf32, #tpu.memory_space<vmem>>, vector<8x128xf32>,
    return
  }
  func.func @transform_0(%arg0: i32) -> (i32, i32) {
    %c0_i32 = arith.constant 0 : i32
    %c0_i32_0 = arith.constant 0 : i32
    return %arg0, %c0_i32 : i32, i32
  }
  func.func @transform_1(%arg0: i32) -> (i32, i32) {
    %c0_i32 = arith.constant 0 : i32
    %c0_i32_0 = arith.constant 0 : i32
    %c0_i32_1 = arith.constant 0 : i32
    return %c0_i32, %c0_i32_0 : i32, i32
  }
  func.func @transform_2(%arg0: i32) -> (i32, i32) {
    %c0_i32 = arith.constant 0 : i32
    %c0_i32_0 = arith.constant 0 : i32
    %c0_i32_1 = arith.constant 0 : i32
    return %c0_i32, %c0_i32_0 : i32, i32
  }
  func.func @transform_3(%arg0: i32) -> (i32, i32) {
    %c0_i32 = arith.constant 0 : i32
    %c0_i32_0 = arith.constant 0 : i32
    %c0_i32_1 = arith.constant 0 : i32
    return %c0_i32, %c0_i32_0 : i32, i32
  }
  func.func @transform_4(%arg0: i32) -> (i32, i32) {
    %c0_i32 = arith.constant 0 : i32
    %c0_i32_0 = arith.constant 0 : i32
    return %arg0, %c0_i32 : i32, i32
  }
}

</mosaic_0001>

<bundles_post_ra>
// kernel: tpu_custom_call.1
= control target key start
LH: loop header
LB: loop body
LE: loop exit
PB: predicated region body
PF: predicated region fallthrough
CT: control target
= control target key end

     0   :  { %9 = vsyncpa [#allocation3], 0  ;;  %s811_s0 = inlined_call_operand.vmem [shape: f32[16,3], index: 0, kind: input, shape index: {}]   ;;  %s812_s1 = inlined_call_operand.vmem [shape: f32[3,128], index: 1, kind: input, shape index: {}]   ;;  %s813_s2 = inlined_call_operand.vmem [shape: f32[3,128], index: 2, kind: input, shape index: {}]   ;;  %s814_s3 = inlined_call_operand.vmem [shape: f32[1,128], index: 3, kind: input, shape index: {}]   ;;  %s815_s4 = inlined_call_operand.hbm [shape: f32[16,128], index: 4, kind: output, shape index: {}]  }
   0x1   :  { %11 = vsyncpa [#allocation3 + $0x1], 0  ;;  %s636_s15 = smov 0   ;;  %s638_s16 = smov 0  }
   0x2   :  { %s640_s17 = smov 0   ;;  %s642_s18 = smov 0  }
   0x3 LB: > { %s657_s19 = sadd.s32 4294967295, %s600_s18   ;;  %s466_s20 = sadd.s32 4294967294, %s600_s18   ;;  %s600_s18 = sphi %s642_s18, %s823_s18   ;;  %s596_s17 = sphi %s640_s17, %s822_s17   ;;  %s592_s16 = sphi %s638_s16, %s821_s16   ;;  %s588_s15 = sphi %s636_s15, %s820_s15  }
   0x4   : > { %s661_s21 = sadd.s32 1, %s600_s18   ;;  %s113_s22 = sadd.s32 1, %s596_s17 }
   0x5   : > { %s110_s23 = ssub.s32 %s600_s18, %s661_s21  ;;  %p123_p0 = scmp.ne.s32.totalorder %s596_s17, %s592_s16 }
   0x6   : > { %p111_p1 = scmp.eq.s32.totalorder %s110_s23, 0  ;;  %p124_p2 = scmp.eq.s32.totalorder %s657_s19, 1 }
   0x7   : > { %p129_p3 = scmp.ne.s32.totalorder %s592_s16, %s588_s15  ;;  %p130_p4 = scmp.eq.s32.totalorder %s466_s20, 1 }
   0x8   : > { %s672_s24 = scalar_select %p111_p1, %s596_s17, %s113_s22  }
   0x9   : > { %p674_p5 = por %p124_p2, %p123_p0  ;;  %p678_p6 = por %p130_p4, %p129_p3 }
   0xa   : > { %p469_p7 = scmp.ge.s32.totalorder %s600_s18, 1  ;;  %p164_p8 = scmp.lt.s32.totalorder %s600_s18, 3 }
   0xc   : > { %p165_p9 = pnand %p469_p7, %p164_p8 }
   0xd   : > { %p189_p10 = scmp.lt.s32.totalorder (!%p165_p9), %s657_s19, 1  ;;  %s186_s29 = sand.u32 (!%p165_p9), 1, %s592_s16  }
   0xe   : > { %168 = sbr.rel (%p165_p9) target bundleno = 259 (0x103), region = 36  ;;  %s470_s30 = sshll.u32 (!%p165_p9), %s186_s29, 3 }
   0xf   : > { %s188_s9 = scalar_lea.vmem (!%p165_p9), [#allocation2], %s470_s30  ;;  %s558_s22 = scalar_lea.hbm (!%p165_p9), %s815_s4, 16 }
  0x10   : > { %s404_s10 = sshll.u32 (!%p165_p9), %s188_s9, 4  ;;  %s405_s10 = int_to_ptr.vmem [resolvable:$true] %s404_s10 }
  0x13   : > { %v602_v0 = vmov 0   ;;  %v603_v1 = vmov 2   ;;  %s190_s27 = scalar_select %p189_p10, %s657_s19, 1  ;;  %v604_v3 = vmov 1   ;;  %v531_v5 = vld [vmem:[%s812_s1] ss:$0 sm:$0xff] }
  0x14   : > { %527 = vset.pattern.permute.xlu0 %v602_v0  ;;  %529 = vset.pattern.permute.xlu1 %v603_v1  ;;  %v532_v6 = vld [vmem:[%s814_s3] ss:$0 sm:$0xff]  ;;  %v534_v8 = vld [vmem:[%s812_s1 + $0x1] ss:$0 sm:$0xff]  ;;  %v536_v9 = vld [vmem:[%s812_s1 + $0x2] ss:$0 sm:$0xff] }
  0x15   : > { %s471_s28 = sshll.u32 %s190_s27, 3  ;;  %v533_v12 = vld [vmem:[%s813_s2] ss:$0 sm:$0xff]  ;;  %v535_v16 = vld [vmem:[%s813_s2 + $0x1] ss:$0 sm:$0xff] }
  0x16   : > { %s192_s5 = scalar_lea.vmem %s811_s0, %s471_s28  ;;  %v537_v19 = vld [vmem:[%s813_s2 + $0x2] ss:$0 sm:$0xff]  ;;  %v605_v37 = vmov 683565275   ;;  %v606_v39 = vmov 2475754826  }
  0x17   : > { %v194_v2 = vld [vmem:[%s192_s5] sm:$0xff]  ;;  %v607_v42 = vmov 2131351028   ;;  %v608_v45 = vmov 2102212464   ;;  %s476_s5 = sshll.u32 %s657_s19, 3 }
  0x18   : > { %198 = vperm.xlu0 %527, %v194_v2   ;;  %217 = vperm.xlu1 %529, %v194_v2   ;;  %v609_v48 = vmov 920167782   ;;  %v610_v51 = vmov 1326507024   ;;  %s402_s8 = scalar_lea.hbm %s815_s4, %s476_s5  ;;  %s392_s19 = scalar_lea.sflag [#allocation3], %s186_s29 }
  0x19   : > { %s406_s11 = sshll.u32 %s402_s8, 4  ;;  %s407_s11 = int_to_ptr.hbm [resolvable:$true] %s406_s11 }
  0x1a   : > { %s552_s12 = sshra.s32 %s407_s11, 4  ;;  %s553_s12 = int_to_ptr.hbm [resolvable:$true] %s552_s12 }
  0x1b   : > { %s554_s13 = scalar_lea.hbm %s553_s12, 8  ;;  %p559_p0 = scmp.lt.s32.totalorder %s553_s12, %s815_s4 }
  0x1c   : > { %p555_p11 = scmp.ne.s32.totalorder %s553_s12, %s554_s13  ;;  %p560_p1 = scmp.lt.s32.totalorder %s558_s22, %s554_s13 }
  0x1e   : > { %p556_p12 = pnand %p555_p11, %p674_p5  ;;  %p561_p2 = por %p560_p1, %p559_p0 }
  0x20   : > { %528 = vset.pattern.permute.xlu0 %v604_v3  ;;  %p557_p13 = pneg %p556_p12 }
  0x21   : > { %209 = vperm.xlu0 %528, %v194_v2  }
  0x22   : > { %p562_p3 = pnand %p561_p2, %p557_p13 }
  0x29   : > { %530 = vset.pattern.permute.xlu0 %v603_v1 }
  0x8a   : > { %v199_v4 = vpop.permute.xlu0 %198  ;;  %v218_v10 = vpop.permute.xlu1 %217 }
  0x8b   : > { %v202_v7 = vmul.f32 %v531_v5, %v199_v4  ;;  %v221_v15 = vmul.f32 %v536_v9, %v218_v10  ;;  %v225_v18 = vmul.f32 %v533_v12, %v199_v4  ;;  %v233_v24 = vmul.f32 %v537_v19, %v218_v10 }
  0x8d   : > { %v206_v13 = vadd.f32 %v532_v6, %v202_v7 }
  0x93   : > { %v210_v11 = vpop.permute.xlu0 %209 }
  0x94   : > { %v213_v14 = vmul.f32 %v534_v8, %v210_v11  ;;  %v229_v21 = vmul.f32 %v535_v16, %v210_v11 }
  0x96   : > { %v214_v17 = vadd.f32 %v213_v14, %v206_v13 }
  0x98   : > { %v222_v20 = vadd.f32 %v221_v15, %v214_v17 }
  0x9a   : > { %v226_v22 = vadd.f32 %v225_v18, %v222_v20 }
  0x9c   : > { %v230_v23 = vadd.f32 %v229_v21, %v226_v22 }
  0x9e   : > { %v711_v25 = vadd.f32 %v233_v24, %v230_v23 }
  0xa0   : > { %v238_v26 = vand.u32 2139095040, %v711_v25  ;;  %v235_v29 = vand.u32 2147483647, %v711_v25  ;;  %vm237_vm12 = vcmp.lt.s32.totalorder %v711_v25, 0 }
  0xa2   : > { %v239_v27 = vshrl.u32 %v238_v26, 23  ;;  %v242_v31 = vand.u32 8388607, %v235_v29  ;;  %vm769_vm13 = vcmp.le.f32.partialorder %v235_v29, 0.7853982 }
  0xa4   : > { %v472_v28 = vadd.s32 4294967169, %v239_v27  ;;  %v243_v35 = vor.u32 8388608, %v242_v31 }
  0xa6   : > { %v245_v30 = vadd.s32 1, %v472_v28  ;;  %v728_v58 = vshll.u32 %v243_v35, 8 }
  0xa8   : > { %vm246_vm0 = vcmp.gt.s32.totalorder %v245_v30, 0  ;;  %v284_v4 = vand.u32 65535, %v728_v58  ;;  %v285_v9 = vshrl.u32 %v728_v58, 16 }
  0xa9   : > { %v247_v32 = vsel %vm246_vm0, %v245_v30, 0 }
  0xaa   : > { %v249_v33 = vand.u32 31, %v247_v32  ;;  %v719_v36 = vshrl.u32 %v247_v32, 5 }
  0xac   : > { %v717_v34 = vsub.s32 32, %v249_v33  ;;  %v252_v38 = vshll.u32 %v605_v37, %v249_v33  ;;  %v255_v40 = vshll.u32 %v606_v39, %v249_v33  ;;  %v258_v44 = vshll.u32 %v607_v42, %v249_v33 }
  0xad   : > { %v261_v47 = vshll.u32 %v608_v45, %v249_v33  ;;  %v264_v50 = vshll.u32 %v609_v48, %v249_v33  ;;  %vm267_vm1 = vcmp.lt.s32.totalorder %v719_v36, 1  ;;  %vm270_vm2 = vcmp.lt.s32.totalorder %v719_v36, 4 }
  0xae   : > { %v253_v41 = vshrl.u32 %v606_v39, %v717_v34  ;;  %v256_v43 = vshrl.u32 %v607_v42, %v717_v34  ;;  %v259_v46 = vshrl.u32 %v608_v45, %v717_v34  ;;  %v262_v49 = vshrl.u32 %v609_v48, %v717_v34 }
  0xaf   : > { %v265_v52 = vshrl.u32 %v610_v51, %v717_v34  ;;  %vm269_vm3 = vcmp.lt.s32.totalorder %v719_v36, 3  ;;  %vm268_vm4 = vcmp.lt.s32.totalorder %v719_v36, 2  ;;  %v251_v31 = vshrl.u32 %v605_v37, %v717_v34 }
  0xb0   : > { %v254_v53 = vor.u32 %v253_v41, %v252_v38  ;;  %v257_v54 = vor.u32 %v256_v43, %v255_v40  ;;  %v260_v55 = vor.u32 %v259_v46, %v258_v44  ;;  %v263_v56 = vor.u32 %v262_v49, %v261_v47 }
  0xb1   : > { %v266_v57 = vor.u32 %v265_v52, %v264_v50 }
  0xb2   : > { %v275_v59 = vsel %vm267_vm1, %v254_v53, %v257_v54  ;;  %v279_v60 = vsel %vm267_vm1, %v257_v54, %v260_v55  ;;  %v276_v61 = vsel %vm270_vm2, %v263_v56, 920167782  ;;  %v272_v24 = vsel %vm270_vm2, %v260_v55, 2102212464 }
  0xb3   : > { %v280_v62 = vsel %vm270_vm2, %v266_v57, 1326507024  ;;  %v277_v63 = vsel %vm269_vm3, %v260_v55, %v276_v61  ;;  %v271_v41 = vsel %vm267_vm1, %v251_v31, %v254_v53  ;;  %v273_v42 = vsel %vm269_vm3, %v257_v54, %v272_v24 }
  0xb4   : > { %v281_v1 = vsel %vm269_vm3, %v263_v56, %v280_v62  ;;  %v278_v2 = vsel %vm268_vm4, %v275_v59, %v277_v63  ;;  %v274_v34 = vsel %vm268_vm4, %v271_v41, %v273_v42  ;;  %vm378_vm1 = vweird.f32 %v711_v25 }
  0xb5   : > { %v282_v3 = vsel %vm268_vm4, %v279_v60, %v281_v1  ;;  %v308_v7 = vand.u32 65535, %v278_v2  ;;  %v309_v8 = vshrl.u32 %v278_v2, 16  ;;  %v328_v49 = vmul.u32 %v728_v58, %v274_v34 }
  0xb6   : > { %v286_v5 = vand.u32 65535, %v282_v3  ;;  %v287_v6 = vshrl.u32 %v282_v3, 16 }
  0xb7   : > { %v311_v11 = vmul.u32 %v309_v8, %v284_v4  ;;  %v312_v13 = vmul.u32 %v308_v7, %v285_v9  ;;  %v310_v16 = vmul.u32 %v308_v7, %v284_v4  ;;  %v313_v19 = vmul.u32 %v309_v8, %v285_v9 }
  0xb8   : > { %v289_v10 = vmul.u32 %v287_v6, %v284_v4  ;;  %v290_v12 = vmul.u32 %v286_v5, %v285_v9  ;;  %v288_v14 = vmul.u32 %v286_v5, %v284_v4  ;;  %v291_v18 = vmul.u32 %v287_v6, %v285_v9 }
  0xb9   : > { %v314_v17 = vshll.u32 %v311_v11, 16  ;;  %v316_v21 = vshll.u32 %v312_v13, 16  ;;  %v315_v39 = vshrl.u32 %v311_v11, 16  ;;  %v317_v45 = vshrl.u32 %v312_v13, 16 }
  0xba   : > { %v292_v15 = vshll.u32 %v289_v10, 16  ;;  %v294_v20 = vshll.u32 %v290_v12, 16  ;;  %v293_v35 = vshrl.u32 %v289_v10, 16  ;;  %v295_v43 = vshrl.u32 %v290_v12, 16 }
  0xbb   : > { %vm318_vm6 = vc.u32 %v310_v16, %v314_v17  ;;  %v320_v23 = vadd.s32 %v314_v17, %v310_v16 }
  0xbc   : > { %vm296_vm5 = vc.u32 %v288_v14, %v292_v15  ;;  %v298_v22 = vadd.s32 %v292_v15, %v288_v14  ;;  %v319_v27 = vsel %vm318_vm6, 1, %v602_v0 }
  0xbd   : > { %v297_v26 = vsel %vm296_vm5, 1, %v602_v0  ;;  %v321_v30 = vadd.s32 %v319_v27, %v313_v19  ;;  %vm322_vm8 = vc.u32 %v320_v23, %v316_v21  ;;  %v324_v47 = vadd.s32 %v320_v23, %v316_v21 }
  0xbe   : > { %v299_v28 = vadd.s32 %v297_v26, %v291_v18  ;;  %vm300_vm7 = vc.u32 %v298_v22, %v294_v20  ;;  %v323_v33 = vsel %vm322_vm8, 1, %v602_v0 }
  0xbf   : > { %v301_v32 = vsel %vm300_vm7, 1, %v602_v0  ;;  %v325_v40 = vadd.s32 %v323_v33, %v321_v30 }
  0xc0   : > { %v303_v38 = vadd.s32 %v301_v32, %v299_v28 }
  0xc1   : > { %v326_v46 = vadd.s32 %v325_v40, %v315_v39 }
  0xc2   : > { %v304_v44 = vadd.s32 %v303_v38, %v293_v35 }
  0xc3   : > { %v327_v0 = vadd.s32 %v326_v46, %v317_v45 }
  0xc4   : > { %v305_v37 = vadd.s32 %v304_v44, %v295_v43 }
  0xc5   : > { %v331_v48 = vadd.s32 1, %v327_v0 }
  0xc6   : > { %vm330_vm9 = vc.u32 %v305_v37, %v324_v47  ;;  %v329_v61 = vadd.s32 %v324_v47, %v305_v37 }
  0xc7   : > { %v332_v50 = vsel %vm330_vm9, %v331_v48, %v327_v0 }
  0xc8   : > { %v333_v51 = vadd.s32 %v332_v50, %v328_v49 }
  0xca   : > { %v334_v52 = vadd.s32 536870912, %v333_v51 }
  0xcc   : > { %v335_v53 = vshrl.u32 %v334_v52, 30 }
  0xce   : > { %v336_v55 = vshll.u32 %v335_v53, 30  ;;  %v359_v12 = vsub.s32 4, %v335_v53 }
  0xd0   : > { %v337_v54 = vsub.s32 %v333_v51, %v336_v55  ;;  %v360_v17 = vsel %vm237_vm12, %v359_v12, %v335_v53 }
  0xd1   : > { %v362_v20 = vsel %vm769_vm13, 0, %v360_v17 }
  0xd2   : > { %vm338_vm10 = vcmp.lt.s32.totalorder %v337_v54, 0  ;;  %v339_v56 = vsub.s32 0, %v337_v54  ;;  %v379_v24 = vadd.s32 3, %v362_v20 }
  0xd4   : > { %v340_v57 = vsel %vm338_vm10, %v339_v56, %v337_v54  ;;  %v380_v31 = vand.u32 3, %v379_v24 }
  0xd5   : > { %v341_v59 = vclz %v340_v57 }
  0xd6   : > { %vm382_vm14 = vcmp.eq.s32.totalorder %v380_v31, 0  ;;  %vm385_vm15 = vcmp.eq.s32.totalorder %v380_v31, 2  ;;  %vm381_vm0 = vcmp.lt.s32.totalorder %v380_v31, 2 }
  0xd7   : > { %v473_v60 = vadd.s32 4294967294, %v341_v59 }
  0xd9   : > { %vm474_vm11 = vcmp.lt.s32.totalorder %v473_v60, 0 }
  0xda   : > { %v344_v36 = vsel %vm474_vm11, 0, %v473_v60 }
  0xdb   : > { %v345_v62 = vsub.s32 32, %v344_v36  ;;  %v349_v63 = vsub.s32 4294967266, %v344_v36  ;;  %v346_v1 = vshll.u32 %v337_v54, %v344_v36 }
  0xdd   : > { %v347_v2 = vshrl.u32 %v329_v61, %v345_v62  ;;  %v350_v3 = vadd.s32 127, %v349_v63 }
  0xdf   : > { %v348_v58 = vor.u32 %v347_v2, %v346_v1  ;;  %v351_v4 = vshll.u32 %v350_v3, 23 }
  0xe1   : > { %v352_v5 = vor.u32 4788187, %v351_v4  ;;  %v355_v7 = vcvt.s32.f32 %v348_v58 }
  0xe3   : > { %v353_v6 = vand.u32 2147483647, %v352_v5 }
  0xe5   : > { %v356_v8 = vmul.f32 %v355_v7, %v353_v6 }
  0xe7   : > { %v357_v9 = vxor.u32 2147483648, %v356_v8 }
  0xe9   : > { %v358_v11 = vsel %vm237_vm12, %v357_v9, %v356_v8 }
  0xea   : > { %v361_v13 = vsel %vm769_vm13, %v711_v25, %v358_v11 }
  0xeb   : > { %v363_v14 = vmul.f32 %v361_v13, %v361_v13 }
  0xed   : > { %v364_v15 = vmul.f32 -0.001358992, %v363_v14  ;;  %v371_v16 = vmul.f32 -0.00019511016, %v363_v14 }
  0xef   : > { %v365_v18 = vadd.f32 0.041655596, %v364_v15  ;;  %v372_v19 = vadd.f32 0.008332121, %v371_v16 }
  0xf1   : > { %v366_v29 = vmul.f32 %v365_v18, %v363_v14  ;;  %v373_v21 = vmul.f32 %v372_v19, %v363_v14 }
  0xf3   : > { %v367_v22 = vadd.f32 -0.4999988, %v366_v29  ;;  %v374_v23 = vadd.f32 -0.16666654, %v373_v21 }
  0xf5   : > { %v368_v26 = vmul.f32 %v367_v22, %v363_v14  ;;  %v375_v27 = vmul.f32 %v374_v23, %v363_v14 }
  0xf7   : > { %v369_v28 = vadd.f32 1.0, %v368_v26  ;;  %v376_v30 = vadd.f32 1.0, %v375_v27 }
  0xf9   : > { %v377_v32 = vmul.f32 %v376_v30, %v361_v13  ;;  %v386_v33 = vxor.u32 2147483648, %v369_v28 }
  0xfb   : > { %v383_v35 = vxor.u32 2147483648, %v377_v32  ;;  %v387_v39 = vsel %vm385_vm15, %v386_v33, %v377_v32 }
  0xfd   : > { %v384_v38 = vsel %vm382_vm14, %v369_v28, %v383_v35 }
  0xfe   : > { %v388_v40 = vsel %vm381_vm0, %v384_v38, %v387_v39 }
  0xff   : > { %v389_v41 = vsel %vm378_vm1, nan, %v388_v40 }
 0x100   : > { %390 = vst [vmem:[%s188_s9] sm:$0xff] %v389_v41 }
 0x101   : > { %565 = shalt.err (!%p562_p3)
}
 0x102   : > { %479 = dma.vmem_to_hbm [thread:$0]  (%p674_p5), %s405_s10, 128, %s407_s11, %s392_s19  }
 0x103 PF: > { %p485_p4 = scmp.ge.s32.totalorder %s600_s18, 2  ;;  %s418_s28 = sand.u32 1, %s588_s15  }
 0x104   : > { %s419_s29 = scalar_lea.sflag [#allocation3], %s418_s28 }
 0x105   : > { %p482_p7 = pnand %p485_p4, %p678_p6 }
 0x107   : > { %p483_p8 = pneg %p482_p7 }
 0x109   : > { %583 = dma.done.wait (%p483_p8), %s419_s29, 128  }
 0x10a   : > { %585 = vsyncadd (%p483_p8), %s419_s29, 4294967168  ;;  %p14_p9 = scmp.ge.s32.totalorder %s661_s21, 4   ;;  %s820_s15 = smov %s592_s16 }
 0x10b   : > { %s821_s16 = smov %s596_s17  ;;  %s822_s17 = smov %s672_s24 }
 0x10c   : > { %s823_s18 = smov %s661_s21  ;;  %16 = sbr.rel (!%p14_p9) target bundleno = 3 (0x3), region = 71 }
 0x111   :  { %425 = vsyncpa [#allocation3], 1 }
 0x112   :  { %427 = vsyncpa [#allocation3 + $0x1], 1 }

</bundles_post_ra>
